<compile_context>
chip_gen: v7x
topology: tpu7x:2x2x1
jax: 0.10.0
libtpu: 0.0.40
codegen_flags: <defaults>
</compile_context>

<pallas_src>
import functools

import jax
import jax.numpy as jnp
import numpy as np
from jax import lax
from jax.experimental import pallas as pl
from jax.experimental.pallas import tpu as pltpu


def _knn_kernel(xq_ref, xtr_ref, code_ref, out_ref, best_d_ref, best_c_ref,
                *, k, num_classes, shift):
    j = pl.program_id(1)                      # train-tile step (innermost)
    last_j = pl.num_programs(1) - 1
    intmax = jnp.int32(2 ** 31 - 1)

    @pl.when(j == 0)
    def _init():
        best_d_ref[...] = jnp.full_like(best_d_ref, jnp.inf)
        best_c_ref[...] = jnp.full_like(best_c_ref, intmax)

    xq = xq_ref[...]                          # (Dp, TQ)
    xt = xtr_ref[...]                         # (TN, Dp)
    code = code_ref[...]                      # (TN, 1) packed (row<<shift)|label
    tq = xq.shape[1]

    # score[n, q] = ||t_n||^2 - 2*<t_n, q_q>  == squared distance minus the
    # per-query constant ||q_q||^2  -> identical neighbor ordering.  One MXU op.
    score = lax.dot_general(xt, xq, (((1,), (0,)), ((), ())),
                            preferred_element_type=jnp.float32)   # (TN, TQ)

    # Merge this tile with the running k-best (select-and-knockout; k is a
    # small static int so the loop is unrolled).  Codes are globally unique,
    # so ties in score resolve to the smallest train-row index (stable order).
    # TODO(synk): for large k (>= ~8) replace with a single-pass sorted-insert
    # top-k to cut the per-tile VPU passes from k to ~1.
    bd = best_d_ref[...]                      # (kp, TQ); rows >= k stay +inf
    bc = best_c_ref[...]
    best_codes = []
    for i in range(k):
        dmin = jnp.minimum(jnp.min(bd, axis=0, keepdims=True),
                           jnp.min(score, axis=0, keepdims=True))       # (1,TQ)
        cmin = jnp.minimum(
            jnp.min(jnp.where(bd <= dmin, bc, intmax), axis=0, keepdims=True),
            jnp.min(jnp.where(score <= dmin, code, intmax),
                    axis=0, keepdims=True))                              # (1,TQ)
        best_d_ref[pl.ds(i, 1), :] = dmin
        best_c_ref[pl.ds(i, 1), :] = cmin
        best_codes.append(cmin)
        bd = jnp.where(bc == cmin, jnp.inf, bd)        # knock out the winner
        score = jnp.where(code == cmin, jnp.inf, score)

    # Majority vote on the final k neighbors; ties broken toward the smallest
    # class id (matches sklearn/scipy mode behavior).
    @pl.when(j == last_j)
    def _vote():
        cls = lax.broadcasted_iota(jnp.int32, (num_classes, tq), 0)
        lbl_mask = jnp.int32((1 << shift) - 1)
        votes = jnp.zeros((num_classes, tq), jnp.int32)
        for cmin in best_codes:
            votes = votes + (cls == (cmin & lbl_mask)).astype(jnp.int32)
        vmax = jnp.max(votes, axis=0, keepdims=True)
        pred = jnp.min(jnp.where(votes >= vmax, cls, jnp.int32(num_classes)),
                       axis=0, keepdims=True)                            # (1,TQ)
        out_ref[...] = pred


def knn_predict(x_train, y_train, x_test, *, n_neighbors, num_classes=2,
                block_q=128, block_n=256):
    """Pallas KNN classifier: returns int32 predicted labels, shape (N_TEST,).

    block_q: query-tile width (lanes).  128 matches v5e's MXU / keeps >=2
             parallel grid steps for v7x's two TensorCores; 256 is better on
             v6e for large n_test.
    block_n: train-tile rows streamed per inner grid step (256 ~ MXU height).
    """
    x_train = jnp.asarray(x_train, jnp.float32)
    x_test = jnp.asarray(x_test, jnp.float32)
    y_train = jnp.asarray(y_train, jnp.int32)
    n_train, d = x_train.shape
    n_test = x_test.shape[0]
    assert 1 <= n_neighbors <= n_train, "n_neighbors must be <= n_train"

    def rup(x, m):
        return ((x + m - 1) // m) * m

    shift = max(1, (num_classes - 1).bit_length())
    n_tile = min(block_n, rup(n_train, 8))
    assert n_neighbors <= n_tile, "n_neighbors must be <= train tile size"
    n_train_pad = rup(n_train, n_tile)
    n_q_pad = rup(max(n_test, 1), block_q)
    d_aug = d + 1
    d_pad = rup(d_aug, 8)
    assert n_train_pad < (1 << (31 - shift)), \
        "packed (row, label) code would overflow int32"

    # --- train side: fold ||t||^2 into an extra feature column -------------
    tt = jnp.sum(x_train * x_train, axis=-1, keepdims=True)          # (N, 1)
    pad_n = n_train_pad - n_train
    if pad_n:
        x_train = jnp.pad(x_train, ((0, pad_n), (0, 0)))
        # padded rows get a huge ||t||^2 so they can never be selected
        tt = jnp.concatenate(
            [tt, jnp.full((pad_n, 1), 3.0e38, jnp.float32)], axis=0)
        y_train = jnp.pad(y_train, (0, pad_n))
    xtr_aug = jnp.concatenate([x_train, tt], axis=1)                  # (Np, D+1)
    if d_pad > d_aug:
        xtr_aug = jnp.pad(xtr_aug, ((0, 0), (0, d_pad - d_aug)))

    rows = jnp.arange(n_train_pad, dtype=jnp.int32)
    code = ((rows << shift) | y_train).reshape(n_train_pad, 1)        # (Np, 1)

    # --- query side: feature-major, -2 folded in, ones row for the tt column
    xq_aug = jnp.concatenate(
        [-2.0 * x_test.T, jnp.ones((1, n_test), jnp.float32)], axis=0)
    xq_aug = jnp.pad(xq_aug, ((0, d_pad - d_aug), (0, n_q_pad - n_test)))

    kp = rup(n_neighbors, 8)   # sublane-aligned k-best scratch
    kernel = functools.partial(_knn_kernel, k=n_neighbors,
                               num_classes=num_classes, shift=shift)

    grid = (n_q_pad // block_q, n_train_pad // n_tile)
    # TODO(synk): when grid[1] == 1 the train inputs are grid-invariant and
    # could use pipeline_mode=pl.Buffered(1) to halve their VMEM footprint.
    out = pl.pallas_call(
        kernel,
        out_shape=jax.ShapeDtypeStruct((1, n_q_pad), jnp.int32),
        grid_spec=pltpu.PrefetchScalarGridSpec(
            num_scalar_prefetch=0,
            grid=grid,
            in_specs=[
                pl.BlockSpec((d_pad, block_q), lambda i, j: (0, i)),   # queries
                pl.BlockSpec((n_tile, d_pad), lambda i, j: (j, 0)),    # train tile
                pl.BlockSpec((n_tile, 1), lambda i, j: (j, 0)),        # packed code
            ],
            out_specs=pl.BlockSpec((1, block_q), lambda i, j: (0, i)),
            scratch_shapes=[
                pltpu.VMEM((kp, block_q), jnp.float32),   # running best scores
                pltpu.VMEM((kp, block_q), jnp.int32),     # running best codes
            ],
        ),
        compiler_params=pltpu.CompilerParams(
            dimension_semantics=("parallel", "arbitrary"),
            vmem_limit_bytes=64 * 1024 * 1024),
    )(xq_aug, xtr_aug, code)
    return out.reshape(n_q_pad)[:n_test]


def _reference_knn(x_train, y_train, x_test, n_neighbors, num_classes=2):
    """Plain numpy reference with identical semantics (sklearn defaults)."""
    xt = np.asarray(x_train, np.float64)
    xq = np.asarray(x_test, np.float64)
    y = np.asarray(y_train)
    dist = ((xq[:, None, :] - xt[None, :, :]) ** 2).sum(-1)
    idx = np.argsort(dist, axis=1, kind="stable")[:, :n_neighbors]
    preds = []
    for row in idx:
        counts = np.bincount(y[row], minlength=num_classes)
        preds.append(int(np.argmax(counts)))  # argmax picks smallest on ties
    return np.asarray(preds, np.int32)


if __name__ == "__main__":
    key = jax.random.PRNGKey(0)
    k1, k2, k3 = jax.random.split(key, 3)

    N_TRAIN, N_TEST, D = 128, 16, 8   # Titanic-like tabular features
    N_NEIGHBORS, NUM_CLASSES = 3, 2

    x_train = jax.random.normal(k1, (N_TRAIN, D), jnp.float32)
    y_train = jax.random.randint(k2, (N_TRAIN,), 0, NUM_CLASSES, jnp.int32)
    x_test = jax.random.normal(k3, (N_TEST, D), jnp.float32)

    pred = knn_predict(x_train, y_train, x_test,
                       n_neighbors=N_NEIGHBORS, num_classes=NUM_CLASSES)
    pred = jax.block_until_ready(pred)

    ref = _reference_knn(x_train, y_train, x_test, N_NEIGHBORS, NUM_CLASSES)
    assert np.array_equal(np.asarray(pred), ref), (pred, ref)

    print("KERNEL_OK")
</pallas_src>

<mosaic_0001>
module attributes {stable_mosaic.version = 11 : i64} {
  func.func @_knn_kernel(%arg0: i32, %arg1: i32, %arg2: memref<16x128xf32, #tpu.memory_space<vmem>>, %arg3: memref<128x16xf32, #tpu.memory_space<vmem>>, %arg4: memref<128x1xi32, #tpu.memory_space<vmem>>, %arg5: memref<1x128xi32, #tpu.memory_space<vmem>>, %arg6: memref<8x128xf32, #tpu.memory_space<vmem>>, %arg7: memref<8x128xi32, #tpu.memory_space<vmem>>) attributes {dimension_semantics = [#tpu.dimension_semantics<parallel>, #tpu.dimension_semantics<arbitrary>], iteration_bounds = array<i64: 1, 1>, scalar_prefetch = 0 : i64, scratch_operands = 2 : i64, tpu.core_type = #tpu.core_type<tc>, window_params = [{transform_indices = @transform_0, window_bounds = array<i64: 16, 128>}, {transform_indices = @transform_1, window_bounds = array<i64: 128, 16>}, {transform_indices = @transform_2, window_bounds = array<i64: 128, 1>}, {transform_indices = @transform_3, window_bounds = array<i64: 1, 128>}]} {
    %c0_i32 = arith.constant 0 : i32
    %0 = arith.cmpi eq, %arg1, %c0_i32 : i32
    %1 = arith.extui %0 : i1 to i32
    %c2147483647_i32 = arith.constant 2147483647 : i32
    %c0_i32_0 = arith.constant 0 : i32
    %2 = arith.cmpi ne, %1, %c0_i32_0 : i32
    scf.if %2 {
      %cst_44 = arith.constant 0x7F800000 : f32
      %96 = vector.broadcast %cst_44 : f32 to vector<8x128xf32>
      %c0_45 = arith.constant 0 : index
      %c0_46 = arith.constant 0 : index
      %97 = vector.load %arg6[%c0_45, %c0_46] : memref<8x128xf32, #tpu.memory_space<vmem>>, vector<8x128xf32>
      tpu.vector_store %arg6[%c0_45, %c0_46], %96 {strides = array<i32>} : memref<8x128xf32, #tpu.memory_space<vmem>>, vector<8x128xf32>,
      %98 = vector.broadcast %c2147483647_i32 : i32 to vector<8x128xi32>
      %c0_47 = arith.constant 0 : index
      %c0_48 = arith.constant 0 : index
      %99 = vector.load %arg7[%c0_47, %c0_48] : memref<8x128xi32, #tpu.memory_space<vmem>>, vector<8x128xi32>
      tpu.vector_store %arg7[%c0_47, %c0_48], %98 {strides = array<i32>} : memref<8x128xi32, #tpu.memory_space<vmem>>, vector<8x128xi32>,
    } else {
    }
    %c0 = arith.constant 0 : index
    %c0_1 = arith.constant 0 : index
    %3 = vector.load %arg2[%c0, %c0_1] : memref<16x128xf32, #tpu.memory_space<vmem>>, vector<16x128xf32>
    %c0_2 = arith.constant 0 : index
    %c0_3 = arith.constant 0 : index
    %4 = vector.load %arg3[%c0_2, %c0_3] : memref<128x16xf32, #tpu.memory_space<vmem>>, vector<128x16xf32>
    %c0_4 = arith.constant 0 : index
    %c0_5 = arith.constant 0 : index
    %5 = vector.load %arg4[%c0_4, %c0_5] : memref<128x1xi32, #tpu.memory_space<vmem>>, vector<128x1xi32>
    %cst = arith.constant dense<0.000000e+00> : vector<128x128xf32>
    %6 = tpu.matmul %4, %3, %cst {dimension_numbers = #tpu.dot_dimension_numbers<[1], [0], [0], [1], [0, 0, 1, 1], [], []>} : vector<128x16xf32>, vector<16x128xf32>, vector<128x128xf32> -> vector<128x128xf32>
    %c0_6 = arith.constant 0 : index
    %c0_7 = arith.constant 0 : index
    %7 = vector.load %arg6[%c0_6, %c0_7] : memref<8x128xf32, #tpu.memory_space<vmem>>, vector<8x128xf32>
    %c0_8 = arith.constant 0 : index
    %c0_9 = arith.constant 0 : index
    %8 = vector.load %arg7[%c0_8, %c0_9] : memref<8x128xi32, #tpu.memory_space<vmem>>, vector<8x128xi32>
    %cst_10 = arith.constant dense<0x7F800000> : vector<128xf32>
    %9 = vector.multi_reduction <minimumf>, %7, %cst_10 [0] : vector<8x128xf32> to vector<128xf32>
    %10 = vector.shape_cast %9 : vector<128xf32> to vector<1x128xf32>
    %cst_11 = arith.constant dense<0x7F800000> : vector<128xf32>
    %11 = vector.multi_reduction <minimumf>, %6, %cst_11 [0] : vector<128x128xf32> to vector<128xf32>
    %12 = vector.shape_cast %11 : vector<128xf32> to vector<1x128xf32>
    %13 = arith.minimumf %10, %12 : vector<1x128xf32>
    %14 = vector.broadcast %13 : vector<1x128xf32> to vector<8x128xf32>
    %15 = arith.cmpf ole, %7, %14 : vector<8x128xf32>
    %c2147483647_i32_12 = arith.constant 2147483647 : i32
    %16 = vector.broadcast %c2147483647_i32_12 : i32 to vector<8x128xi32>
    %17 = arith.select %15, %8, %16 : vector<8x128xi1>, vector<8x128xi32>
    %cst_13 = arith.constant dense<2147483647> : vector<128xi32>
    %18 = vector.multi_reduction <minsi>, %17, %cst_13 [0] : vector<8x128xi32> to vector<128xi32>
    %19 = vector.shape_cast %18 : vector<128xi32> to vector<1x128xi32>
    %20 = vector.broadcast %13 : vector<1x128xf32> to vector<128x128xf32>
    %21 = arith.cmpf ole, %6, %20 : vector<128x128xf32>
    %c2147483647_i32_14 = arith.constant 2147483647 : i32
    %22 = vector.shape_cast %5 : vector<128x1xi32> to vector<128x1xi32>
    %23 = vector.broadcast %22 : vector<128x1xi32> to vector<128x128xi32>
    %24 = vector.broadcast %c2147483647_i32_14 : i32 to vector<128x128xi32>
    %25 = arith.select %21, %23, %24 : vector<128x128xi1>, vector<128x128xi32>
    %cst_15 = arith.constant dense<2147483647> : vector<128xi32>
    %26 = vector.multi_reduction <minsi>, %25, %cst_15 [0] : vector<128x128xi32> to vector<128xi32>
    %27 = vector.shape_cast %26 : vector<128xi32> to vector<1x128xi32>
    %28 = arith.minsi %19, %27 : vector<1x128xi32>
    %c0_16 = arith.constant 0 : index
    %c0_17 = arith.constant 0 : index
    %29 = vector.load %arg6[%c0_16, %c0_17] : memref<8x128xf32, #tpu.memory_space<vmem>>, vector<1x128xf32>
    tpu.vector_store %arg6[%c0_16, %c0_17], %13 {strides = array<i32>} : memref<8x128xf32, #tpu.memory_space<vmem>>, vector<1x128xf32>,
    %c0_18 = arith.constant 0 : index
    %c0_19 = arith.constant 0 : index
    %30 = vector.load %arg7[%c0_18, %c0_19] : memref<8x128xi32, #tpu.memory_space<vmem>>, vector<1x128xi32>
    tpu.vector_store %arg7[%c0_18, %c0_19], %28 {strides = array<i32>} : memref<8x128xi32, #tpu.memory_space<vmem>>, vector<1x128xi32>,
    %31 = vector.broadcast %28 : vector<1x128xi32> to vector<8x128xi32>
    %32 = arith.cmpi eq, %8, %31 : vector<8x128xi32>
    %cst_20 = arith.constant 0x7F800000 : f32
    %33 = vector.broadcast %cst_20 : f32 to vector<8x128xf32>
    %34 = arith.select %32, %33, %7 : vector<8x128xi1>, vector<8x128xf32>
    %35 = vector.broadcast %5 : vector<128x1xi32> to vector<128x128xi32>
    %36 = vector.broadcast %28 : vector<1x128xi32> to vector<128x128xi32>
    %37 = arith.cmpi eq, %35, %36 : vector<128x128xi32>
    %cst_21 = arith.constant 0x7F800000 : f32
    %38 = vector.broadcast %cst_21 : f32 to vector<128x128xf32>
    %39 = arith.select %37, %38, %6 : vector<128x128xi1>, vector<128x128xf32>
    %cst_22 = arith.constant dense<0x7F800000> : vector<128xf32>
    %40 = vector.multi_reduction <minimumf>, %34, %cst_22 [0] : vector<8x128xf32> to vector<128xf32>
    %41 = vector.shape_cast %40 : vector<128xf32> to vector<1x128xf32>
    %cst_23 = arith.constant dense<0x7F800000> : vector<128xf32>
    %42 = vector.multi_reduction <minimumf>, %39, %cst_23 [0] : vector<128x128xf32> to vector<128xf32>
    %43 = vector.shape_cast %42 : vector<128xf32> to vector<1x128xf32>
    %44 = arith.minimumf %41, %43 : vector<1x128xf32>
    %45 = vector.broadcast %44 : vector<1x128xf32> to vector<8x128xf32>
    %46 = arith.cmpf ole, %34, %45 : vector<8x128xf32>
    %c2147483647_i32_24 = arith.constant 2147483647 : i32
    %47 = vector.broadcast %c2147483647_i32_24 : i32 to vector<8x128xi32>
    %48 = arith.select %46, %8, %47 : vector<8x128xi1>, vector<8x128xi32>
    %cst_25 = arith.constant dense<2147483647> : vector<128xi32>
    %49 = vector.multi_reduction <minsi>, %48, %cst_25 [0] : vector<8x128xi32> to vector<128xi32>
    %50 = vector.shape_cast %49 : vector<128xi32> to vector<1x128xi32>
    %51 = vector.broadcast %44 : vector<1x128xf32> to vector<128x128xf32>
    %52 = arith.cmpf ole, %39, %51 : vector<128x128xf32>
    %c2147483647_i32_26 = arith.constant 2147483647 : i32
    %53 = vector.shape_cast %5 : vector<128x1xi32> to vector<128x1xi32>
    %54 = vector.broadcast %53 : vector<128x1xi32> to vector<128x128xi32>
    %55 = vector.broadcast %c2147483647_i32_26 : i32 to vector<128x128xi32>
    %56 = arith.select %52, %54, %55 : vector<128x128xi1>, vector<128x128xi32>
    %cst_27 = arith.constant dense<2147483647> : vector<128xi32>
    %57 = vector.multi_reduction <minsi>, %56, %cst_27 [0] : vector<128x128xi32> to vector<128xi32>
    %58 = vector.shape_cast %57 : vector<128xi32> to vector<1x128xi32>
    %59 = arith.minsi %50, %58 : vector<1x128xi32>
    %c1 = arith.constant 1 : index
    %c0_28 = arith.constant 0 : index
    %60 = vector.load %arg6[%c1, %c0_28] : memref<8x128xf32, #tpu.memory_space<vmem>>, vector<1x128xf32>
    tpu.vector_store %arg6[%c1, %c0_28], %44 {strides = array<i32>} : memref<8x128xf32, #tpu.memory_space<vmem>>, vector<1x128xf32>,
    %c1_29 = arith.constant 1 : index
    %c0_30 = arith.constant 0 : index
    %61 = vector.load %arg7[%c1_29, %c0_30] : memref<8x128xi32, #tpu.memory_space<vmem>>, vector<1x128xi32>
    tpu.vector_store %arg7[%c1_29, %c0_30], %59 {strides = array<i32>} : memref<8x128xi32, #tpu.memory_space<vmem>>, vector<1x128xi32>,
    %62 = vector.broadcast %59 : vector<1x128xi32> to vector<8x128xi32>
    %63 = arith.cmpi eq, %8, %62 : vector<8x128xi32>
    %cst_31 = arith.constant 0x7F800000 : f32
    %64 = vector.broadcast %cst_31 : f32 to vector<8x128xf32>
    %65 = arith.select %63, %64, %34 : vector<8x128xi1>, vector<8x128xf32>
    %66 = vector.broadcast %5 : vector<128x1xi32> to vector<128x128xi32>
    %67 = vector.broadcast %59 : vector<1x128xi32> to vector<128x128xi32>
    %68 = arith.cmpi eq, %66, %67 : vector<128x128xi32>
    %cst_32 = arith.constant 0x7F800000 : f32
    %69 = vector.broadcast %cst_32 : f32 to vector<128x128xf32>
    %70 = arith.select %68, %69, %39 : vector<128x128xi1>, vector<128x128xf32>
    %cst_33 = arith.constant dense<0x7F800000> : vector<128xf32>
    %71 = vector.multi_reduction <minimumf>, %65, %cst_33 [0] : vector<8x128xf32> to vector<128xf32>
    %72 = vector.shape_cast %71 : vector<128xf32> to vector<1x128xf32>
    %cst_34 = arith.constant dense<0x7F800000> : vector<128xf32>
    %73 = vector.multi_reduction <minimumf>, %70, %cst_34 [0] : vector<128x128xf32> to vector<128xf32>
    %74 = vector.shape_cast %73 : vector<128xf32> to vector<1x128xf32>
    %75 = arith.minimumf %72, %74 : vector<1x128xf32>
    %76 = vector.broadcast %75 : vector<1x128xf32> to vector<8x128xf32>
    %77 = arith.cmpf ole, %65, %76 : vector<8x128xf32>
    %c2147483647_i32_35 = arith.constant 2147483647 : i32
    %78 = vector.broadcast %c2147483647_i32_35 : i32 to vector<8x128xi32>
    %79 = arith.select %77, %8, %78 : vector<8x128xi1>, vector<8x128xi32>
    %cst_36 = arith.constant dense<2147483647> : vector<128xi32>
    %80 = vector.multi_reduction <minsi>, %79, %cst_36 [0] : vector<8x128xi32> to vector<128xi32>
    %81 = vector.shape_cast %80 : vector<128xi32> to vector<1x128xi32>
    %82 = vector.broadcast %75 : vector<1x128xf32> to vector<128x128xf32>
    %83 = arith.cmpf ole, %70, %82 : vector<128x128xf32>
    %c2147483647_i32_37 = arith.constant 2147483647 : i32
    %84 = vector.shape_cast %5 : vector<128x1xi32> to vector<128x1xi32>
    %85 = vector.broadcast %84 : vector<128x1xi32> to vector<128x128xi32>
    %86 = vector.broadcast %c2147483647_i32_37 : i32 to vector<128x128xi32>
    %87 = arith.select %83, %85, %86 : vector<128x128xi1>, vector<128x128xi32>
    %cst_38 = arith.constant dense<2147483647> : vector<128xi32>
    %88 = vector.multi_reduction <minsi>, %87, %cst_38 [0] : vector<128x128xi32> to vector<128xi32>
    %89 = vector.shape_cast %88 : vector<128xi32> to vector<1x128xi32>
    %90 = arith.minsi %81, %89 : vector<1x128xi32>
    %c2 = arith.constant 2 : index
    %c0_39 = arith.constant 0 : index
    %91 = vector.load %arg6[%c2, %c0_39] : memref<8x128xf32, #tpu.memory_space<vmem>>, vector<1x128xf32>
    tpu.vector_store %arg6[%c2, %c0_39], %75 {strides = array<i32>} : memref<8x128xf32, #tpu.memory_space<vmem>>, vector<1x128xf32>,
    %c2_40 = arith.constant 2 : index
    %c0_41 = arith.constant 0 : index
    %92 = vector.load %arg7[%c2_40, %c0_41] : memref<8x128xi32, #tpu.memory_space<vmem>>, vector<1x128xi32>
    tpu.vector_store %arg7[%c2_40, %c0_41], %90 {strides = array<i32>} : memref<8x128xi32, #tpu.memory_space<vmem>>, vector<1x128xi32>,
    %c0_i32_42 = arith.constant 0 : i32
    %93 = arith.cmpi eq, %arg1, %c0_i32_42 : i32
    %94 = arith.extui %93 : i1 to i32
    %c0_i32_43 = arith.constant 0 : i32
    %95 = arith.cmpi ne, %94, %c0_i32_43 : i32
    scf.if %95 {
      %96 = tpu.iota {dimensions = array<i32: 0>} : vector<2x128xi32>
      %c0_i32_44 = arith.constant 0 : i32
      %97 = vector.broadcast %c0_i32_44 : i32 to vector<2x128xi32>
      %c1_i32 = arith.constant 1 : i32
      %98 = vector.broadcast %c1_i32 : i32 to vector<1x128xi32>
      %99 = arith.andi %28, %98 : vector<1x128xi32>
      %100 = vector.broadcast %99 : vector<1x128xi32> to vector<2x128xi32>
      %101 = arith.cmpi eq, %96, %100 : vector<2x128xi32>
      %102 = arith.extui %101 : vector<2x128xi1> to vector<2x128xi32>
      %103 = arith.addi %97, %102 : vector<2x128xi32>
      %c1_i32_45 = arith.constant 1 : i32
      %104 = vector.broadcast %c1_i32_45 : i32 to vector<1x128xi32>
      %105 = arith.andi %59, %104 : vector<1x128xi32>
      %106 = vector.broadcast %105 : vector<1x128xi32> to vector<2x128xi32>
      %107 = arith.cmpi eq, %96, %106 : vector<2x128xi32>
      %108 = arith.extui %107 : vector<2x128xi1> to vector<2x128xi32>
      %109 = arith.addi %103, %108 : vector<2x128xi32>
      %c1_i32_46 = arith.constant 1 : i32
      %110 = vector.broadcast %c1_i32_46 : i32 to vector<1x128xi32>
      %111 = arith.andi %90, %110 : vector<1x128xi32>
      %112 = vector.broadcast %111 : vector<1x128xi32> to vector<2x128xi32>
      %113 = arith.cmpi eq, %96, %112 : vector<2x128xi32>
      %114 = arith.extui %113 : vector<2x128xi1> to vector<2x128xi32>
      %115 = arith.addi %109, %114 : vector<2x128xi32>
      %cst_47 = arith.constant dense<-2147483648> : vector<128xi32>
      %116 = vector.multi_reduction <maxsi>, %115, %cst_47 [0] : vector<2x128xi32> to vector<128xi32>
      %117 = vector.shape_cast %116 : vector<128xi32> to vector<1x128xi32>
      %118 = vector.broadcast %117 : vector<1x128xi32> to vector<2x128xi32>
      %119 = arith.cmpi sge, %115, %118 : vector<2x128xi32>
      %c2_i32 = arith.constant 2 : i32
      %120 = vector.broadcast %c2_i32 : i32 to vector<2x128xi32>
      %121 = arith.select %119, %96, %120 : vector<2x128xi1>, vector<2x128xi32>
      %cst_48 = arith.constant dense<2147483647> : vector<128xi32>
      %122 = vector.multi_reduction <minsi>, %121, %cst_48 [0] : vector<2x128xi32> to vector<128xi32>
      %123 = vector.shape_cast %122 : vector<128xi32> to vector<1x128xi32>
      %c0_49 = arith.constant 0 : index
      %c0_50 = arith.constant 0 : index
      %124 = vector.load %arg5[%c0_49, %c0_50] : memref<1x128xi32, #tpu.memory_space<vmem>>, vector<1x128xi32>
      tpu.vector_store %arg5[%c0_49, %c0_50], %123 {strides = array<i32>} : memref<1x128xi32, #tpu.memory_space<vmem>>, vector<1x128xi32>,
    } else {
    }
    return
  }
  func.func @transform_0(%arg0: i32, %arg1: i32) -> (i32, i32) {
    %c0_i32 = arith.constant 0 : i32
    %c0_i32_0 = arith.constant 0 : i32
    return %c0_i32, %arg0 : i32, i32
  }
  func.func @transform_1(%arg0: i32, %arg1: i32) -> (i32, i32) {
    %c0_i32 = arith.constant 0 : i32
    %c0_i32_0 = arith.constant 0 : i32
    return %arg1, %c0_i32 : i32, i32
  }
  func.func @transform_2(%arg0: i32, %arg1: i32) -> (i32, i32) {
    %c0_i32 = arith.constant 0 : i32
    %c0_i32_0 = arith.constant 0 : i32
    return %arg1, %c0_i32 : i32, i32
  }
  func.func @transform_3(%arg0: i32, %arg1: i32) -> (i32, i32) {
    %c0_i32 = arith.constant 0 : i32
    %c0_i32_0 = arith.constant 0 : i32
    return %c0_i32, %arg0 : i32, i32
  }
}

</mosaic_0001>

<bundles_post_ra>
// kernel: tpu_custom_call.1
= control target key start
LH: loop header
LB: loop body
LE: loop exit
PB: predicated region body
PF: predicated region fallthrough
CT: control target
= control target key end

     0   :  { %8 = vsyncpa [#allocation5], 0  ;;  %s1571_s0 = inlined_call_operand.hbm [shape: f32[16,128], index: 0, kind: input, shape index: {}]   ;;  %s1572_s1 = inlined_call_operand.hbm [shape: f32[128,16], index: 1, kind: input, shape index: {}]   ;;  %s1573_s2 = inlined_call_operand.hbm [shape: s32[128,1], index: 2, kind: input, shape index: {}]   ;;  %s1574_s3 = inlined_call_operand.hbm [shape: s32[1,128], index: 3, kind: output, shape index: {}]  }
   0x1   :  { %9 = vsyncpa [#allocation8], 0 }
   0x2   :  { %10 = vsyncpa [#allocation6], 0  ;;  %s987_s12 = smov [#allocation7]   ;;  %s988_s14 = smov [#allocation4]  }
   0x3   :  { %s28_s13 = sshll.u32 %s987_s12, 4  ;;  %s16_s15 = sshll.u32 %s988_s14, 4  ;;  %s29_s13 = int_to_ptr.vmem [resolvable:$true] %s28_s13  ;;  %s1016_s15 = int_to_ptr.vmem [resolvable:$true] %s16_s15 }
   0x4   :  { %s893_s18 = scalar_lea.hbm %s1572_s1, 2048 }
   0x5   :  { %p894_p0 = scmp.ne.s32.totalorder %s1572_s1, %s893_s18  ;;  %p897_p1 = scmp.lt.u32.totalorder %s893_s18, %s1572_s1 }
   0x7   :  { %p899_p2 = pnand %p897_p1, %p894_p0 }
   0x9   :  { %902 = shalt.err (!%p899_p2)
}
   0xa   :  { %s903_s23 = scalar_lea.vmem %s29_s13, 2048  ;;  %p908_p4 = scmp.lt.s32.totalorder %s29_s13, %s29_s13 }
   0xb   :  { %p904_p3 = scmp.ne.s32.totalorder %s29_s13, %s903_s23  ;;  %p909_p5 = scmp.lt.s32.totalorder %s903_s23, %s903_s23 }
   0xd   :  { %p910_p6 = por %p909_p5, %p908_p4 }
   0xf   :  { %p911_p7 = pnand %p910_p6, %p904_p3 }
  0x11   :  { %914 = shalt.err (!%p911_p7)
}
  0x12   :  { %s989_s24 = smov 128   ;;  %s990_s25 = smov 8  }
  0x13   :  { %34 = dma.hbm_to_vmem [thread:$0]  %s1572_s1, 2048, %s29_s13, [#allocation8], %s989_s24, %s989_s24, %s990_s25  }
  0x14   :  { %s915_s30 = scalar_lea.hbm %s1571_s0, 256 }
  0x15   :  { %p916_p8 = scmp.ne.s32.totalorder %s1571_s0, %s915_s30  ;;  %p919_p9 = scmp.lt.u32.totalorder %s915_s30, %s1571_s0 }
  0x17   :  { %p921_p10 = pnand %p919_p9, %p916_p8 }
  0x19   :  { %924 = shalt.err (!%p921_p10)
}
  0x1a   :  { %s925_s8 = scalar_lea.vmem %s1016_s15, 256  ;;  %p930_p12 = scmp.lt.s32.totalorder %s1016_s15, %s1016_s15 }
  0x1b   :  { %p926_p11 = scmp.ne.s32.totalorder %s1016_s15, %s925_s8  ;;  %p931_p13 = scmp.lt.s32.totalorder %s925_s8, %s925_s8 }
  0x1d   :  { %p932_p0 = por %p931_p13, %p930_p12 }
  0x1f   :  { %p933_p1 = pnand %p932_p0, %p926_p11 }
  0x21   :  { %936 = shalt.err (!%p933_p1)
}
  0x22   :  { %22 = dma.hbm_to_vmem [thread:$0]  %s1571_s0, 256, %s1016_s15, [#allocation5], %s989_s24, %s989_s24, %s990_s25  }
  0x23   :  { %s991_s10 = smov [#allocation9]   ;;  %s937_s14 = scalar_lea.hbm %s1573_s2, 2048 }
  0x24   :  { %s40_s11 = sshll.u32 %s991_s10, 4  ;;  %p938_p2 = scmp.ne.s32.totalorder %s1573_s2, %s937_s14  ;;  %s41_s11 = int_to_ptr.vmem [resolvable:$true] %s40_s11 }
  0x25   :  { %p941_p3 = scmp.lt.u32.totalorder %s937_s14, %s1573_s2 }
  0x27   :  { %p943_p4 = pnand %p941_p3, %p938_p2 }
  0x29   :  { %946 = shalt.err (!%p943_p4)
}
  0x2a   :  { %s947_s20 = scalar_lea.vmem %s41_s11, 2048  ;;  %p952_p6 = scmp.lt.s32.totalorder %s41_s11, %s41_s11 }
  0x2b   :  { %p948_p5 = scmp.ne.s32.totalorder %s41_s11, %s947_s20  ;;  %p953_p7 = scmp.lt.s32.totalorder %s947_s20, %s947_s20 }
  0x2d   :  { %p954_p8 = por %p953_p7, %p952_p6 }
  0x2f   :  { %p955_p9 = pnand %p954_p8, %p948_p5 }
  0x31   :  { %958 = shalt.err (!%p955_p9)
}
  0x32   :  { %46 = dma.hbm_to_vmem [thread:$0]  %s1573_s2, 2048, %s41_s11, [#allocation8], %s989_s24, %s989_s24, %s990_s25  }
  0x33   :  { %981 = dma.done.wait [#allocation5], 256  }
  0x34   :  { %982 = vsyncadd [#allocation5], 4294967040 }
  0x35   :  { %983 = dma.done.wait [#allocation8], 4096  }
  0x36   :  { %984 = vsyncadd [#allocation8], 4294963200  ;;  %v992_v0 = vmov 0   ;;  %vm96_vm0 = vcmask 130048   ;;  %v62_v1 = vld [vmem:[#allocation4] sm:$0xff]  ;;  %v63_v2 = vld [vmem:[#allocation4 + $0x8] sm:$0xff] }
  0x37   :  { %884 = vset.pattern.permute.xlu1 %v992_v0  ;;  %883 = vset.pattern.permute.xlu0 %v992_v0  ;;  %v64_v3 = vld [vmem:[#allocation7] sm:$0xff]  ;;  %v868_v4 = vpack.c.bf16 %v63_v2, %v62_v1  ;;  %v65_v6 = vld [vmem:[#allocation7 + $0x8] sm:$0xff]  ;;  %v66_v8 = vld [vmem:[#allocation7 + $0x10] sm:$0xff]  ;;  %v993_v57 = vmov inf   ;;  %s995_s2 = smov [#allocation10]  }
  0x38   :  { %844 = vmatprep.mubr.msk.f32.mxu0 %vm96_vm0, %v64_v3  ;;  %v72_v5 = vld [vmem:[#allocation7 + $0x40] sm:$0xff]  ;;  %v73_v7 = vld [vmem:[#allocation7 + $0x48] sm:$0xff]  ;;  %v74_v9 = vld [vmem:[#allocation7 + $0x50] sm:$0xff]  ;;  %v292_v58 = vrot.slane %v993_v57, 4  ;;  %s796_s21 = sshll.u32 %s995_s2, 4  ;;  %s797_s21 = int_to_ptr.vmem [resolvable:$true] %s796_s21 }
  0x39   :  { %856 = vmatprep.mubr.msk.f32.mxu1 %vm96_vm0, %v72_v5  ;;  %869 = vmatprep.subr.bf16.mxu0 %v868_v4  ;;  %v82_v10 = vld [vmem:[#allocation9 + $0x10] sm:$0xff]  ;;  %v80_v11 = vld [vmem:[#allocation9] sm:$0xff]  ;;  %v67_v12 = vld [vmem:[#allocation7 + $0x18] sm:$0xff]  ;;  %s959_s22 = scalar_lea.vmem %s797_s21, 16  ;;  %s963_s23 = scalar_lea.vmem %s797_s21, 32 }
  0x3a   :  { %872 = vmatprep.subr.bf16.mxu1 %v868_v4  ;;  %871 = vmatpush3.bf16.msra.mxu0 %v868_v4  ;;  %v75_v13 = vld [vmem:[#allocation7 + $0x58] sm:$0xff]  ;;  %v68_v14 = vld [vmem:[#allocation7 + $0x20] sm:$0xff]  ;;  %v81_v17 = vld [vmem:[#allocation9 + $0x8] sm:$0xff]  ;;  %p960_p10 = scmp.ne.s32.totalorder %s797_s21, %s959_s22  ;;  %p964_p11 = scmp.lt.s32.totalorder %s797_s21, %s797_s21 }
  0x3b   :  { %873 = vmatpush3.bf16.msra.mxu1 %v868_v4  ;;  %v76_v15 = vld [vmem:[#allocation7 + $0x60] sm:$0xff]  ;;  %354 = vperm.xlu1 %884, %v82_v10   ;;  %v83_v16 = vld [vmem:[#allocation9 + $0x18] sm:$0xff]  ;;  %v69_v18 = vld [vmem:[#allocation7 + $0x28] sm:$0xff]  ;;  %v294_v10 = vrot.slane %v292_v58, 2  ;;  %p965_p12 = scmp.lt.s32.totalorder %s963_s23, %s959_s22 }
  0x3c   :  { %348 = vperm.xlu0 %883, %v80_v11   ;;  %v77_v19 = vld [vmem:[#allocation7 + $0x68] sm:$0xff]  ;;  %v70_v20 = vld [vmem:[#allocation7 + $0x30] sm:$0xff]  ;;  %v84_v23 = vld [vmem:[#allocation9 + $0x20] sm:$0xff] }
  0x3d   :  { %845 = vmatmul.mubr.msk.f32.vlgmr.msra.gmra.mrb[0].mxu0 %vm96_vm0, %v65_v6  ;;  %v78_v21 = vld [vmem:[#allocation7 + $0x70] sm:$0xff]  ;;  %v85_v22 = vld [vmem:[#allocation9 + $0x28] sm:$0xff]  ;;  %v71_v24 = vld [vmem:[#allocation7 + $0x38] sm:$0xff]  ;;  %p966_p13 = por %p965_p12, %p964_p11 }
  0x3e   :  { %857 = vmatmul.mubr.msk.f32.vlgmr.msra.gmra.mrb[0].mxu1 %vm96_vm0, %v73_v7  ;;  %847 = vmatprep.mubr.msk.f32.mxu0 %vm96_vm0, %v66_v8  ;;  %v79_v25 = vld [vmem:[#allocation7 + $0x78] sm:$0xff]  ;;  %v86_v27 = vld [vmem:[#allocation9 + $0x30] sm:$0xff]  ;;  %v89_v28 = vld [vmem:[#allocation9 + $0x48] sm:$0xff] }
  0x3f   :  { %859 = vmatprep.mubr.msk.f32.mxu1 %vm96_vm0, %v74_v9  ;;  %357 = vperm.xlu1 %884, %v83_v16   ;;  %v87_v26 = vld [vmem:[#allocation9 + $0x38] sm:$0xff]  ;;  %v88_v29 = vld [vmem:[#allocation9 + $0x40] sm:$0xff]  ;;  %v90_v31 = vld [vmem:[#allocation9 + $0x50] sm:$0xff]  ;;  %p967_p0 = pnand %p966_p13, %p960_p10 }
  0x40   :  { %351 = vperm.xlu0 %883, %v81_v17   ;;  %v91_v30 = vld [vmem:[#allocation9 + $0x58] sm:$0xff]  ;;  %v93_v32 = vld [vmem:[#allocation9 + $0x68] sm:$0xff]  ;;  %v92_v33 = vld [vmem:[#allocation9 + $0x60] sm:$0xff] }
  0x41   :  { %848 = vmatmul.mubr.msk.f32.gmra.mrb[2].mxu0 %vm96_vm0, %v67_v12  ;;  %v95_v34 = vld [vmem:[#allocation9 + $0x78] sm:$0xff]  ;;  %v94_v35 = vld [vmem:[#allocation9 + $0x70] sm:$0xff] }
  0x42   :  { %860 = vmatmul.mubr.msk.f32.gmra.mrb[2].mxu1 %vm96_vm0, %v75_v13  ;;  %850 = vmatprep.mubr.msk.f32.mxu0 %vm96_vm0, %v68_v14  ;;  %v295_v13 = vmin.f32 %v292_v58, %v294_v10 }
  0x43   :  { %862 = vmatprep.mubr.msk.f32.mxu1 %vm96_vm0, %v76_v15  ;;  %363 = vperm.xlu1 %884, %v85_v22  }
  0x44   :  { %360 = vperm.xlu0 %883, %v84_v23  }
  0x45   :  { %851 = vmatmul.mubr.msk.f32.gmra.mrb[4].mxu0 %vm96_vm0, %v69_v18  ;;  %v296_v18 = vrot.slane %v295_v13, 1 }
  0x46   :  { %863 = vmatmul.mubr.msk.f32.gmra.mrb[4].mxu1 %vm96_vm0, %v77_v19  ;;  %853 = vmatprep.mubr.msk.f32.mxu0 %vm96_vm0, %v70_v20 }
  0x47   :  { %865 = vmatprep.mubr.msk.f32.mxu1 %vm96_vm0, %v78_v21  ;;  %369 = vperm.xlu1 %884, %v87_v26   ;;  %v1154_v23 = vmin.f32 %v295_v13, %v296_v18 }
  0x48   :  { %366 = vperm.xlu0 %883, %v86_v27  }
  0x49   :  { %854 = vmatmul.mubr.msk.f32.gmra.mrb[6].mxu0 %vm96_vm0, %v71_v24 }
  0x4a   :  { %866 = vmatmul.mubr.msk.f32.gmra.mrb[6].mxu1 %vm96_vm0, %v79_v25 }
  0x4b   :  { %375 = vperm.xlu1 %884, %v89_v28  }
  0x4c   :  { %372 = vperm.xlu0 %883, %v88_v29   ;;  %v994_v29 = vmov 2147483647  }
  0x4f   :  { %381 = vperm.xlu1 %884, %v91_v30   ;;  %v322_v30 = vrot.slane %v994_v29, 4 }
  0x50   :  { %378 = vperm.xlu0 %883, %v90_v31  }
  0x51   :  { %vm886_vm10 = vcmp.gt.s32.totalorder %v322_v30, 2147483647 }
  0x52   :  { %v324_v58 = vsel %vm886_vm10, 2147483647, %v322_v30 }
  0x53   :  { %387 = vperm.xlu1 %884, %v93_v32  }
  0x54   :  { %384 = vperm.xlu0 %883, %v92_v33  }
  0x57   :  { %393 = vperm.xlu1 %884, %v95_v34  }
  0x58   :  { %390 = vperm.xlu0 %883, %v94_v35  }
  0xba   :  { %v1104_v45 = vpop.permute.xlu1 %354 }
  0xbb   :  { %v1094_v40 = vpop.permute.xlu0 %348 }
  0xbe   :  { %v1133_v63 = vpop.permute.xlu1 %357 }
  0xbf   :  { %v1118_v52 = vpop.permute.xlu0 %351 }
  0xc2   :  { %v1144_v9 = vpop.permute.xlu1 %363 }
  0xc3   :  { %v1142_v8 = vpop.permute.xlu0 %360 }
  0xc6   :  { %v1148_v16 = vpop.permute.xlu1 %369 }
  0xc7   :  { %v1146_v15 = vpop.permute.xlu0 %366 }
  0xca   :  { %v1152_v22 = vpop.permute.xlu1 %375 }
  0xcb   :  { %v1150_v21 = vpop.permute.xlu0 %372 }
  0xce   :  { %v1159_v28 = vpop.permute.xlu1 %381 }
  0xcf   :  { %v1157_v27 = vpop.permute.xlu0 %378 }
  0xd2   :  { %v1182_v33 = vpop.permute.xlu1 %387 }
  0xd3   :  { %v1177_v31 = vpop.permute.xlu0 %384 }
 0x110   :  { %v1086_v36 = vpop.f32.mrb[0].mxu0 }
 0x111   :  { %v1088_v37 = vpop.f32.mrb[0].mxu1  ;;  %v1090_v38 = vpop.f32.mrb[1].mxu0 }
 0x112   :  { %v1092_v39 = vpop.f32.mrb[1].mxu1 }
 0x114   :  { %v1096_v41 = vpop.f32.mrb[2].mxu0 }
 0x115   :  { %v1098_v42 = vpop.f32.mrb[2].mxu1  ;;  %v1100_v43 = vpop.f32.mrb[3].mxu0 }
 0x116   :  { %v1102_v44 = vpop.f32.mrb[3].mxu1 }
 0x118   :  { %v1106_v46 = vpop.f32.mrb[4].mxu0 }
 0x119   :  { %v1108_v47 = vpop.f32.mrb[4].mxu1  ;;  %v299_v48 = vmin.f32 %v1086_v36, %v1106_v46  ;;  %v1112_v49 = vpop.f32.mrb[5].mxu0 }
 0x11a   :  { %v1114_v50 = vpop.f32.mrb[5].mxu1  ;;  %v298_v51 = vmin.f32 %v1090_v38, %v1112_v49 }
 0x11b   :  { %v303_v53 = vmin.f32 %v299_v48, %v1088_v37 }
 0x11c   :  { %v1121_v54 = vpop.f32.mrb[6].mxu0  ;;  %v302_v55 = vmin.f32 %v298_v51, %v1092_v39 }
 0x11d   :  { %v1124_v56 = vpop.f32.mrb[6].mxu1  ;;  %v307_v59 = vmin.f32 %v303_v53, %v1108_v47  ;;  %v301_v60 = vmin.f32 %v1096_v41, %v1121_v54  ;;  %v1129_v61 = vpop.f32.mrb[7].mxu0 }
 0x11e   :  { %v1131_v62 = vpop.f32.mrb[7].mxu1  ;;  %v306_v1 = vmin.f32 %v302_v55, %v1114_v50  ;;  %v300_v2 = vmin.f32 %v1100_v43, %v1129_v61 }
 0x11f   :  { %v305_v3 = vmin.f32 %v301_v60, %v1098_v42 }
 0x120   :  { %v310_v4 = vmin.f32 %v306_v1, %v307_v59  ;;  %v304_v5 = vmin.f32 %v300_v2, %v1102_v44 }
 0x121   :  { %v309_v6 = vmin.f32 %v305_v3, %v1124_v56 }
 0x122   :  { %v308_v7 = vmin.f32 %v304_v5, %v1131_v62 }
 0x124   :  { %v311_v11 = vmin.f32 %v308_v7, %v309_v6  ;;  %v1223_v6 = vpop.permute.xlu0 %390  ;;  %v1225_v7 = vpop.permute.xlu1 %393 }
 0x126   :  { %v312_v12 = vmin.f32 %v310_v4, %v311_v11 }
 0x128   :  { %v313_v14 = vrot.slane %v312_v12, 4 }
 0x12a   :  { %v314_v17 = vmin.f32 %v312_v12, %v313_v14 }
 0x12c   :  { %v315_v19 = vrot.slane %v314_v17, 2 }
 0x12e   :  { %v316_v20 = vmin.f32 %v314_v17, %v315_v19 }
 0x130   :  { %v317_v24 = vrot.slane %v316_v20, 1 }
 0x132   :  { %v318_v25 = vmin.f32 %v316_v20, %v317_v24 }
 0x134   :  { %v319_v26 = vmin.f32 %v1154_v23, %v318_v25  ;;  %v325_v25 = vrot.slane %v324_v58, 2 }
 0x136   :  { %vm331_vm1 = vcmp.le.f32.partialorder %v1090_v38, %v319_v26  ;;  %vm332_vm2 = vcmp.le.f32.partialorder %v1086_v36, %v319_v26  ;;  %vm333_vm3 = vcmp.le.f32.partialorder %v1100_v43, %v319_v26  ;;  %vm334_vm4 = vcmp.le.f32.partialorder %v1096_v41, %v319_v26 }
 0x137   :  { %vm335_vm5 = vcmp.le.f32.partialorder %v1112_v49, %v319_v26  ;;  %vm336_vm6 = vcmp.le.f32.partialorder %v1106_v46, %v319_v26  ;;  %vm337_vm7 = vcmp.le.f32.partialorder %v1129_v61, %v319_v26  ;;  %vm338_vm8 = vcmp.le.f32.partialorder %v1121_v54, %v319_v26 }
 0x138   :  { %vm339_vm9 = vcmp.le.f32.partialorder %v1092_v39, %v319_v26  ;;  %vm341_vm11 = vcmp.le.f32.partialorder %v1102_v44, %v319_v26  ;;  %vm342_vm12 = vcmp.le.f32.partialorder %v1098_v42, %v319_v26  ;;  %vm343_vm13 = vcmp.le.f32.partialorder %v1114_v50, %v319_v26 }
 0x139   :  { %vm344_vm14 = vcmp.le.f32.partialorder %v1108_v47, %v319_v26  ;;  %vm345_vm15 = vcmp.le.f32.partialorder %v1131_v62, %v319_v26  ;;  %vm346_vm0 = vcmp.le.f32.partialorder %v1124_v56, %v319_v26  ;;  %v395_v32 = vsel %vm331_vm1, %v1094_v40, 2147483647 }
 0x13a   :  { %v399_v34 = vsel %vm335_vm5, %v1142_v8, 2147483647  ;;  %v396_v35 = vsel %vm332_vm2, %v1118_v52, 2147483647  ;;  %v397_v48 = vsel %vm333_vm3, %v1104_v45, 2147483647  ;;  %vm1575_vm2 = vcmp.le.f32.partialorder %v1088_v37, %v319_v26 }
 0x13b   :  { %v398_v51 = vsel %vm334_vm4, %v1133_v63, 2147483647  ;;  %vm411_vm1 = vcmp.lt.s32.totalorder %v395_v32, %v399_v34  ;;  %v400_v53 = vsel %vm336_vm6, %v1144_v9, 2147483647  ;;  %v401_v55 = vsel %vm337_vm7, %v1146_v15, 2147483647 }
 0x13c   :  { %v402_v57 = vsel %vm338_vm8, %v1148_v16, 2147483647  ;;  %v403_v59 = vsel %vm339_vm9, %v1150_v21, 2147483647  ;;  %v404_v60 = vsel %vm1575_vm2, %v1152_v22, 2147483647  ;;  %v412_v5 = vsel %vm411_vm1, %v395_v32, %v399_v34 }
 0x13d   :  { %v405_v1 = vsel %vm341_vm11, %v1157_v27, 2147483647  ;;  %v406_v2 = vsel %vm342_vm12, %v1159_v28, 2147483647  ;;  %v407_v3 = vsel %vm343_vm13, %v1177_v31, 2147483647  ;;  %vm413_vm3 = vcmp.lt.s32.totalorder %v396_v35, %v400_v53 }
 0x13e   :  { %v408_v4 = vsel %vm344_vm14, %v1182_v33, 2147483647  ;;  %vm415_vm4 = vcmp.lt.s32.totalorder %v397_v48, %v401_v55  ;;  %vm417_vm5 = vcmp.lt.s32.totalorder %v398_v51, %v402_v57  ;;  %vm419_vm6 = vcmp.lt.s32.totalorder %v412_v5, %v403_v59 }
 0x13f   :  { %v409_v10 = vsel %vm345_vm15, %v1223_v6, 2147483647  ;;  %v414_v11 = vsel %vm413_vm3, %v396_v35, %v400_v53  ;;  %v416_v12 = vsel %vm415_vm4, %v397_v48, %v401_v55  ;;  %v418_v13 = vsel %vm417_vm5, %v398_v51, %v402_v57 }
 0x140   :  { %v410_v14 = vsel %vm346_vm0, %v1225_v7, 2147483647  ;;  %v420_v17 = vsel %vm419_vm6, %v412_v5, %v403_v59  ;;  %vm421_vm7 = vcmp.lt.s32.totalorder %v414_v11, %v404_v60  ;;  %vm423_vm8 = vcmp.lt.s32.totalorder %v416_v12, %v405_v1 }
 0x141   :  { %v422_v18 = vsel %vm421_vm7, %v414_v11, %v404_v60  ;;  %v424_v19 = vsel %vm423_vm8, %v416_v12, %v405_v1  ;;  %vm425_vm9 = vcmp.lt.s32.totalorder %v418_v13, %v406_v2  ;;  %vm427_vm10 = vcmp.lt.s32.totalorder %v420_v17, %v407_v3 }
 0x142   :  { %v426_v20 = vsel %vm425_vm9, %v418_v13, %v406_v2  ;;  %v428_v24 = vsel %vm427_vm10, %v420_v17, %v407_v3  ;;  %vm429_vm11 = vcmp.lt.s32.totalorder %v422_v18, %v408_v4  ;;  %vm431_vm12 = vcmp.lt.s32.totalorder %v424_v19, %v409_v10 }
 0x143   :  { %v430_v29 = vsel %vm429_vm11, %v422_v18, %v408_v4  ;;  %v432_v30 = vsel %vm431_vm12, %v424_v19, %v409_v10  ;;  %vm433_vm13 = vcmp.lt.s32.totalorder %v426_v20, %v410_v14  ;;  %vm326_vm0 = vcmp.lt.s32.totalorder %v324_v58, %v325_v25 }
 0x144   :  { %v434_v32 = vsel %vm433_vm13, %v426_v20, %v410_v14  ;;  %vm435_vm14 = vcmp.lt.s32.totalorder %v428_v24, %v430_v29  ;;  %v327_v51 = vsel %vm326_vm0, %v324_v58, %v325_v25 }
 0x145   :  { %v436_v34 = vsel %vm435_vm14, %v428_v24, %v430_v29  ;;  %vm437_vm15 = vcmp.lt.s32.totalorder %v432_v30, %v434_v32  ;;  %v328_v55 = vrot.slane %v327_v51, 1 }
 0x146   :  { %v438_v26 = vsel %vm437_vm15, %v432_v30, %v434_v32 }
 0x147   :  { %vm439_vm1 = vcmp.lt.s32.totalorder %v436_v34, %v438_v26  ;;  %vm329_vm4 = vcmp.lt.s32.totalorder %v327_v51, %v328_v55 }
 0x148   :  { %v440_v35 = vsel %vm439_vm1, %v436_v34, %v438_v26  ;;  %v1233_v1 = vsel %vm329_vm4, %v327_v51, %v328_v55 }
 0x149   :  { %v441_v48 = vrot.slane %v440_v35, 4 }
 0x14b   :  { %vm442_vm2 = vcmp.lt.s32.totalorder %v440_v35, %v441_v48 }
 0x14c   :  { %v443_v53 = vsel %vm442_vm2, %v440_v35, %v441_v48 }
 0x14d   :  { %v444_v57 = vrot.slane %v443_v53, 2 }
 0x14f   :  { %vm445_vm3 = vcmp.lt.s32.totalorder %v443_v53, %v444_v57 }
 0x150   :  { %v446_v59 = vsel %vm445_vm3, %v443_v53, %v444_v57 }
 0x151   :  { %v447_v60 = vrot.slane %v446_v59, 1 }
 0x153   :  { %vm448_vm5 = vcmp.lt.s32.totalorder %v446_v59, %v447_v60 }
 0x154   :  { %v449_v2 = vsel %vm448_vm5, %v446_v59, %v447_v60 }
 0x155   :  { %vm450_vm6 = vcmp.lt.s32.totalorder %v1233_v1, %v449_v2 }
 0x156   :  { %v1237_v3 = vsel %vm450_vm6, %v1233_v1, %v449_v2 }
 0x157   :  { %vm456_vm7 = vcmp.eq.s32.totalorder %v1094_v40, %v1237_v3  ;;  %vm457_vm8 = vcmp.eq.s32.totalorder %v1118_v52, %v1237_v3  ;;  %vm458_vm9 = vcmp.eq.s32.totalorder %v1104_v45, %v1237_v3  ;;  %vm459_vm10 = vcmp.eq.s32.totalorder %v1133_v63, %v1237_v3 }
 0x158   :  { %vm460_vm11 = vcmp.eq.s32.totalorder %v1142_v8, %v1237_v3  ;;  %vm461_vm12 = vcmp.eq.s32.totalorder %v1144_v9, %v1237_v3  ;;  %vm462_vm13 = vcmp.eq.s32.totalorder %v1146_v15, %v1237_v3  ;;  %vm463_vm14 = vcmp.eq.s32.totalorder %v1148_v16, %v1237_v3 }
 0x159   :  { %vm464_vm15 = vcmp.eq.s32.totalorder %v1150_v21, %v1237_v3  ;;  %vm465_vm0 = vcmp.eq.s32.totalorder %v1152_v22, %v1237_v3  ;;  %vm466_vm1 = vcmp.eq.s32.totalorder %v1157_v27, %v1237_v3  ;;  %vm467_vm2 = vcmp.eq.s32.totalorder %v1159_v28, %v1237_v3 }
 0x15a   :  { %vm468_vm3 = vcmp.eq.s32.totalorder %v1177_v31, %v1237_v3  ;;  %vm469_vm4 = vcmp.eq.s32.totalorder %v1182_v33, %v1237_v3  ;;  %vm470_vm5 = vcmp.eq.s32.totalorder %v1223_v6, %v1237_v3  ;;  %vm471_vm6 = vcmp.eq.s32.totalorder %v1225_v7, %v1237_v3 }
 0x15b   :  { %v1275_v58 = vsel %vm456_vm7, inf, %v1090_v38  ;;  %v1281_v4 = vsel %vm457_vm8, inf, %v1086_v36  ;;  %v1287_v5 = vsel %vm458_vm9, inf, %v1100_v43  ;;  %v1293_v10 = vsel %vm459_vm10, inf, %v1096_v41 }
 0x15c   :  { %v1299_v38 = vsel %vm460_vm11, inf, %v1112_v49  ;;  %v1305_v36 = vsel %vm461_vm12, inf, %v1106_v46  ;;  %v1311_v43 = vsel %vm462_vm13, inf, %v1129_v61  ;;  %v1317_v41 = vsel %vm463_vm14, inf, %v1121_v54 }
 0x15d   :  { %v1323_v49 = vsel %vm464_vm15, inf, %v1092_v39  ;;  %v1329_v46 = vsel %vm465_vm0, inf, %v1088_v37  ;;  %v1335_v61 = vsel %vm466_vm1, inf, %v1102_v44  ;;  %v1341_v54 = vsel %vm467_vm2, inf, %v1098_v42 }
 0x15e   :  { %v1347_v39 = vsel %vm468_vm3, inf, %v1114_v50  ;;  %v1353_v37 = vsel %vm469_vm4, inf, %v1108_v47  ;;  %v1359_v44 = vsel %vm470_vm5, inf, %v1131_v62  ;;  %v1365_v42 = vsel %vm471_vm6, inf, %v1124_v56 }
 0x15f   :  { %v494_v50 = vmin.f32 %v1275_v58, %v1299_v38  ;;  %v495_v11 = vmin.f32 %v1281_v4, %v1305_v36  ;;  %v496_v47 = vmin.f32 %v1287_v5, %v1311_v43  ;;  %v497_v12 = vmin.f32 %v1293_v10, %v1317_v41 }
 0x161   :  { %v498_v62 = vmin.f32 %v494_v50, %v1323_v49  ;;  %v499_v13 = vmin.f32 %v495_v11, %v1329_v46  ;;  %v500_v14 = vmin.f32 %v496_v47, %v1335_v61  ;;  %v501_v56 = vmin.f32 %v497_v12, %v1341_v54 }
 0x163   :  { %v502_v17 = vmin.f32 %v498_v62, %v1347_v39  ;;  %v503_v18 = vmin.f32 %v499_v13, %v1353_v37  ;;  %v504_v19 = vmin.f32 %v500_v14, %v1359_v44  ;;  %v505_v20 = vmin.f32 %v501_v56, %v1365_v42 }
 0x165   :  { %v506_v24 = vmin.f32 %v502_v17, %v503_v18  ;;  %v507_v25 = vmin.f32 %v504_v19, %v505_v20 }
 0x167   :  { %v508_v29 = vmin.f32 %v506_v24, %v507_v25 }
 0x169   :  { %v509_v30 = vrot.slane %v508_v29, 4 }
 0x16b   :  { %v510_v32 = vmin.f32 %v508_v29, %v509_v30 }
 0x16d   :  { %v511_v34 = vrot.slane %v510_v32, 2 }
 0x16f   :  { %v512_v26 = vmin.f32 %v510_v32, %v511_v34 }
 0x171   :  { %v513_v35 = vrot.slane %v512_v26, 1 }
 0x173   :  { %v514_v48 = vmin.f32 %v512_v26, %v513_v35 }
 0x175   :  { %v515_v51 = vmin.f32 %v1154_v23, %v514_v48 }
 0x177   :  { %vm528_vm7 = vcmp.le.f32.partialorder %v1281_v4, %v515_v51  ;;  %vm527_vm8 = vcmp.le.f32.partialorder %v1275_v58, %v515_v51  ;;  %vm529_vm9 = vcmp.le.f32.partialorder %v1287_v5, %v515_v51  ;;  %vm530_vm10 = vcmp.le.f32.partialorder %v1293_v10, %v515_v51 }
 0x178   :  { %vm531_vm11 = vcmp.le.f32.partialorder %v1299_v38, %v515_v51  ;;  %vm536_vm12 = vcmp.le.f32.partialorder %v1329_v46, %v515_v51  ;;  %vm539_vm13 = vcmp.le.f32.partialorder %v1347_v39, %v515_v51  ;;  %vm532_vm14 = vcmp.le.f32.partialorder %v1305_v36, %v515_v51 }
 0x179   :  { %vm540_vm15 = vcmp.le.f32.partialorder %v1353_v37, %v515_v51  ;;  %vm541_vm0 = vcmp.le.f32.partialorder %v1359_v44, %v515_v51  ;;  %vm533_vm2 = vcmp.le.f32.partialorder %v1311_v43, %v515_v51  ;;  %vm534_vm3 = vcmp.le.f32.partialorder %v1317_v41, %v515_v51 }
 0x17a   :  { %vm535_vm4 = vcmp.le.f32.partialorder %v1323_v49, %v515_v51  ;;  %v543_v53 = vsel %vm527_vm8, %v1094_v40, 2147483647  ;;  %vm537_vm5 = vcmp.le.f32.partialorder %v1335_v61, %v515_v51  ;;  %vm538_vm6 = vcmp.le.f32.partialorder %v1341_v54, %v515_v51 }
 0x17b   :  { %v547_v55 = vsel %vm531_vm11, %v1142_v8, 2147483647  ;;  %v544_v57 = vsel %vm528_vm7, %v1118_v52, 2147483647  ;;  %v545_v59 = vsel %vm529_vm9, %v1104_v45, 2147483647  ;;  %vm1576_vm11 = vcmp.le.f32.partialorder %v1365_v42, %v515_v51 }
 0x17c   :  { %v546_v60 = vsel %vm530_vm10, %v1133_v63, 2147483647  ;;  %vm559_vm1 = vcmp.lt.s32.totalorder %v543_v53, %v547_v55  ;;  %v548_v2 = vsel %vm532_vm14, %v1144_v9, 2147483647  ;;  %v549_v50 = vsel %vm533_vm2, %v1146_v15, 2147483647 }
 0x17d   :  { %v550_v11 = vsel %vm534_vm3, %v1148_v16, 2147483647  ;;  %v551_v47 = vsel %vm535_vm4, %v1150_v21, 2147483647  ;;  %v552_v12 = vsel %vm536_vm12, %v1152_v22, 2147483647  ;;  %v560_v17 = vsel %vm559_vm1, %v543_v53, %v547_v55 }
 0x17e   :  { %v553_v62 = vsel %vm537_vm5, %v1157_v27, 2147483647  ;;  %v554_v13 = vsel %vm538_vm6, %v1159_v28, 2147483647  ;;  %v555_v14 = vsel %vm539_vm13, %v1177_v31, 2147483647  ;;  %vm561_vm7 = vcmp.lt.s32.totalorder %v544_v57, %v548_v2 }
 0x17f   :  { %v556_v56 = vsel %vm540_vm15, %v1182_v33, 2147483647  ;;  %vm563_vm8 = vcmp.lt.s32.totalorder %v545_v59, %v549_v50  ;;  %vm565_vm9 = vcmp.lt.s32.totalorder %v546_v60, %v550_v11  ;;  %vm567_vm10 = vcmp.lt.s32.totalorder %v560_v17, %v551_v47 }
 0x180   :  { %v557_v18 = vsel %vm541_vm0, %v1223_v6, 2147483647  ;;  %v562_v19 = vsel %vm561_vm7, %v544_v57, %v548_v2  ;;  %v564_v20 = vsel %vm563_vm8, %v545_v59, %v549_v50  ;;  %v566_v24 = vsel %vm565_vm9, %v546_v60, %v550_v11 }
 0x181   :  { %v558_v25 = vsel %vm1576_vm11, %v1225_v7, 2147483647  ;;  %v568_v29 = vsel %vm567_vm10, %v560_v17, %v551_v47  ;;  %vm569_vm12 = vcmp.lt.s32.totalorder %v562_v19, %v552_v12  ;;  %vm571_vm13 = vcmp.lt.s32.totalorder %v564_v20, %v553_v62 }
 0x182   :  { %v570_v30 = vsel %vm569_vm12, %v562_v19, %v552_v12  ;;  %v572_v32 = vsel %vm571_vm13, %v564_v20, %v553_v62  ;;  %vm573_vm14 = vcmp.lt.s32.totalorder %v566_v24, %v554_v13  ;;  %vm575_vm15 = vcmp.lt.s32.totalorder %v568_v29, %v555_v14 }
 0x183   :  { %v574_v34 = vsel %vm573_vm14, %v566_v24, %v554_v13  ;;  %v576_v26 = vsel %vm575_vm15, %v568_v29, %v555_v14  ;;  %vm577_vm1 = vcmp.lt.s32.totalorder %v570_v30, %v556_v56  ;;  %vm579_vm2 = vcmp.lt.s32.totalorder %v572_v32, %v557_v18 }
 0x184   :  { %v578_v35 = vsel %vm577_vm1, %v570_v30, %v556_v56  ;;  %v580_v48 = vsel %vm579_vm2, %v572_v32, %v557_v18  ;;  %vm581_vm0 = vcmp.lt.s32.totalorder %v574_v34, %v558_v25  ;;  %v753_v11 = vlaneseq }
 0x185   :  { %v582_v53 = vsel %vm581_vm0, %v574_v34, %v558_v25  ;;  %vm583_vm3 = vcmp.lt.s32.totalorder %v576_v26, %v578_v35  ;;  %v755_v13 = vand.u32 1, %v1237_v3 }
 0x186   :  { %v584_v55 = vsel %vm583_vm3, %v576_v26, %v578_v35  ;;  %vm585_vm4 = vcmp.lt.s32.totalorder %v580_v48, %v582_v53  ;;  %v1432_v62 = vshrl.u32 %v753_v11, 7 }
 0x187   :  { %v586_v51 = vsel %vm585_vm4, %v580_v48, %v582_v53 }
 0x188   :  { %vm587_vm5 = vcmp.lt.s32.totalorder %v584_v55, %v586_v51  ;;  %vm1442_vm14 = vcmp.eq.s32.totalorder %v1432_v62, %v755_v13 }
 0x189   :  { %v588_v57 = vsel %vm587_vm5, %v584_v55, %v586_v51  ;;  %v757_v35 = vsel %vm1442_vm14, 1, %v992_v0 }
 0x18a   :  { %v589_v59 = vrot.slane %v588_v57, 4 }
 0x18c   :  { %vm590_vm6 = vcmp.lt.s32.totalorder %v588_v57, %v589_v59 }
 0x18d   :  { %v591_v60 = vsel %vm590_vm6, %v588_v57, %v589_v59 }
 0x18e   :  { %v592_v2 = vrot.slane %v591_v60, 2 }
 0x190   :  { %vm593_vm7 = vcmp.lt.s32.totalorder %v591_v60, %v592_v2 }
 0x191   :  { %v594_v50 = vsel %vm593_vm7, %v591_v60, %v592_v2 }
 0x192   :  { %v595_v47 = vrot.slane %v594_v50, 1 }
 0x194   :  { %vm596_vm8 = vcmp.lt.s32.totalorder %v594_v50, %v595_v47 }
 0x195   :  { %v597_v12 = vsel %vm596_vm8, %v594_v50, %v595_v47 }
 0x196   :  { %vm598_vm9 = vcmp.lt.s32.totalorder %v1233_v1, %v597_v12 }
 0x197   :  { %v599_v14 = vsel %vm598_vm9, %v1233_v1, %v597_v12 }
 0x198   :  { %vm604_vm10 = vcmp.eq.s32.totalorder %v1094_v40, %v599_v14  ;;  %vm605_vm11 = vcmp.eq.s32.totalorder %v1118_v52, %v599_v14  ;;  %vm606_vm12 = vcmp.eq.s32.totalorder %v1104_v45, %v599_v14  ;;  %vm607_vm13 = vcmp.eq.s32.totalorder %v1133_v63, %v599_v14 }
 0x199   :  { %vm608_vm15 = vcmp.eq.s32.totalorder %v1142_v8, %v599_v14  ;;  %vm609_vm1 = vcmp.eq.s32.totalorder %v1144_v9, %v599_v14  ;;  %vm610_vm2 = vcmp.eq.s32.totalorder %v1146_v15, %v599_v14  ;;  %vm611_vm0 = vcmp.eq.s32.totalorder %v1148_v16, %v599_v14 }
 0x19a   :  { %vm612_vm3 = vcmp.eq.s32.totalorder %v1150_v21, %v599_v14  ;;  %vm613_vm4 = vcmp.eq.s32.totalorder %v1152_v22, %v599_v14  ;;  %vm614_vm5 = vcmp.eq.s32.totalorder %v1157_v27, %v599_v14  ;;  %vm616_vm6 = vcmp.eq.s32.totalorder %v1177_v31, %v599_v14 }
 0x19b   :  { %vm617_vm7 = vcmp.eq.s32.totalorder %v1182_v33, %v599_v14  ;;  %vm618_vm8 = vcmp.eq.s32.totalorder %v1223_v6, %v599_v14  ;;  %vm619_vm9 = vcmp.eq.s32.totalorder %v1225_v7, %v599_v14  ;;  %v1458_v3 = vsel %vm605_vm11, inf, %v1281_v4 }
 0x19c   :  { %v620_v17 = vsel %vm604_vm10, inf, %v1275_v58  ;;  %v622_v18 = vsel %vm606_vm12, inf, %v1287_v5  ;;  %v623_v19 = vsel %vm607_vm13, inf, %v1293_v10  ;;  %v624_v20 = vsel %vm608_vm15, inf, %v1299_v38 }
 0x19d   :  { %v625_v24 = vsel %vm609_vm1, inf, %v1305_v36  ;;  %v626_v25 = vsel %vm610_vm2, inf, %v1311_v43  ;;  %v627_v4 = vsel %vm611_vm0, inf, %v1317_v41  ;;  %v1474_v29 = vsel %vm613_vm4, inf, %v1329_v46 }
 0x19e   :  { %vm615_vm10 = vcmp.eq.s32.totalorder %v1159_v28, %v599_v14  ;;  %v628_v58 = vsel %vm612_vm3, inf, %v1323_v49  ;;  %v1481_v5 = vsel %vm616_vm6, inf, %v1347_v39  ;;  %v1484_v10 = vsel %vm617_vm7, inf, %v1353_v37 }
 0x19f   :  { %v1487_v38 = vsel %vm618_vm8, inf, %v1359_v44  ;;  %v1490_v36 = vsel %vm619_vm9, inf, %v1365_v42  ;;  %v642_v43 = vmin.f32 %v620_v17, %v624_v20  ;;  %v643_v41 = vmin.f32 %v1458_v3, %v625_v24 }
 0x1a0   :  { %v644_v46 = vmin.f32 %v622_v18, %v626_v25  ;;  %v645_v30 = vmin.f32 %v623_v19, %v627_v4  ;;  %v758_v32 = vand.u32 1, %v599_v14  ;;  %v630_v49 = vsel %vm614_vm5, inf, %v1335_v61 }
 0x1a1   :  { %v631_v39 = vsel %vm615_vm10, inf, %v1341_v54  ;;  %v646_v37 = vmin.f32 %v642_v43, %v628_v58  ;;  %v647_v34 = vmin.f32 %v643_v41, %v1474_v29 }
 0x1a2   :  { %v648_v44 = vmin.f32 %v644_v46, %v630_v49  ;;  %v649_v26 = vmin.f32 %v645_v30, %v631_v39  ;;  %vm759_vm11 = vcmp.eq.s32.totalorder %v1432_v62, %v758_v32 }
 0x1a3   :  { %v650_v42 = vmin.f32 %v646_v37, %v1481_v5  ;;  %v760_v48 = vsel %vm759_vm11, 1, %v992_v0  ;;  %v651_v53 = vmin.f32 %v647_v34, %v1484_v10 }
 0x1a4   :  { %v652_v61 = vmin.f32 %v648_v44, %v1487_v38  ;;  %v653_v54 = vmin.f32 %v649_v26, %v1490_v36  ;;  %v1507_v55 = vadd.s32 %v760_v48, %v757_v35 }
 0x1a5   :  { %v654_v51 = vmin.f32 %v650_v42, %v651_v53 }
 0x1a6   :  { %v655_v57 = vmin.f32 %v652_v61, %v653_v54 }
 0x1a8   :  { %v656_v59 = vmin.f32 %v654_v51, %v655_v57 }
 0x1aa   :  { %v657_v60 = vrot.slane %v656_v59, 4 }
 0x1ac   :  { %v658_v2 = vmin.f32 %v656_v59, %v657_v60 }
 0x1ae   :  { %v659_v50 = vrot.slane %v658_v2, 2 }
 0x1b0   :  { %v660_v11 = vmin.f32 %v658_v2, %v659_v50 }
 0x1b2   :  { %v661_v47 = vrot.slane %v660_v11, 1 }
 0x1b4   :  { %v662_v12 = vmin.f32 %v660_v11, %v661_v47 }
 0x1b6   :  { %v663_v13 = vmin.f32 %v1154_v23, %v662_v12 }
 0x1b8   :  { %vm675_vm12 = vcmp.le.f32.partialorder %v620_v17, %v663_v13  ;;  %vm676_vm13 = vcmp.le.f32.partialorder %v1458_v3, %v663_v13  ;;  %vm677_vm14 = vcmp.le.f32.partialorder %v622_v18, %v663_v13  ;;  %vm678_vm15 = vcmp.le.f32.partialorder %v623_v19, %v663_v13 }
 0x1b9   :  { %vm679_vm1 = vcmp.le.f32.partialorder %v624_v20, %v663_v13  ;;  %vm680_vm2 = vcmp.le.f32.partialorder %v625_v24, %v663_v13  ;;  %vm681_vm0 = vcmp.le.f32.partialorder %v626_v25, %v663_v13  ;;  %vm682_vm3 = vcmp.le.f32.partialorder %v627_v4, %v663_v13 }
 0x1ba   :  { %vm683_vm4 = vcmp.le.f32.partialorder %v628_v58, %v663_v13  ;;  %vm684_vm5 = vcmp.le.f32.partialorder %v1474_v29, %v663_v13  ;;  %vm685_vm6 = vcmp.le.f32.partialorder %v630_v49, %v663_v13  ;;  %vm686_vm7 = vcmp.le.f32.partialorder %v631_v39, %v663_v13 }
 0x1bb   :  { %vm687_vm8 = vcmp.le.f32.partialorder %v1481_v5, %v663_v13  ;;  %vm689_vm10 = vcmp.le.f32.partialorder %v1487_v38, %v663_v13  ;;  %vm690_vm11 = vcmp.le.f32.partialorder %v1490_v36, %v663_v13  ;;  %v691_v23 = vsel %vm675_vm12, %v1094_v40, 2147483647 }
 0x1bc   :  { %v695_v14 = vsel %vm679_vm1, %v1142_v8, 2147483647  ;;  %v692_v56 = vsel %vm676_vm13, %v1118_v52, 2147483647  ;;  %v693_v20 = vsel %vm677_vm14, %v1104_v45, 2147483647  ;;  %vm1579_vm12 = vcmp.le.f32.partialorder %v1484_v10, %v663_v13 }
 0x1bd   :  { %v694_v43 = vsel %vm678_vm15, %v1133_v63, 2147483647  ;;  %vm707_vm9 = vcmp.lt.s32.totalorder %v691_v23, %v695_v14  ;;  %v696_v41 = vsel %vm680_vm2, %v1144_v9, 2147483647  ;;  %v697_v17 = vsel %vm681_vm0, %v1146_v15, 2147483647 }
 0x1be   :  { %v698_v40 = vsel %vm682_vm3, %v1148_v16, 2147483647  ;;  %v699_v8 = vsel %vm683_vm4, %v1150_v21, 2147483647  ;;  %v700_v45 = vsel %vm684_vm5, %v1152_v22, 2147483647  ;;  %v708_v16 = vsel %vm707_vm9, %v691_v23, %v695_v14 }
 0x1bf   :  { %v701_v52 = vsel %vm685_vm6, %v1157_v27, 2147483647  ;;  %v702_v63 = vsel %vm686_vm7, %v1159_v28, 2147483647  ;;  %v703_v9 = vsel %vm687_vm8, %v1177_v31, 2147483647  ;;  %vm709_vm13 = vcmp.lt.s32.totalorder %v692_v56, %v696_v41 }
 0x1c0   :  { %v704_v15 = vsel %vm1579_vm12, %v1182_v33, 2147483647  ;;  %vm711_vm14 = vcmp.lt.s32.totalorder %v693_v20, %v697_v17  ;;  %vm713_vm15 = vcmp.lt.s32.totalorder %v694_v43, %v698_v40  ;;  %vm715_vm1 = vcmp.lt.s32.totalorder %v708_v16, %v699_v8 }
 0x1c1   :  { %v705_v21 = vsel %vm689_vm10, %v1223_v6, 2147483647  ;;  %v710_v22 = vsel %vm709_vm13, %v692_v56, %v696_v41  ;;  %v712_v27 = vsel %vm711_vm14, %v693_v20, %v697_v17  ;;  %v714_v28 = vsel %vm713_vm15, %v694_v43, %v698_v40 }
 0x1c2   :  { %v706_v31 = vsel %vm690_vm11, %v1225_v7, 2147483647  ;;  %v716_v3 = vsel %vm715_vm1, %v708_v16, %v699_v8  ;;  %vm717_vm2 = vcmp.lt.s32.totalorder %v710_v22, %v700_v45  ;;  %vm719_vm0 = vcmp.lt.s32.totalorder %v712_v27, %v701_v52 }
 0x1c3   :  { %v718_v33 = vsel %vm717_vm2, %v710_v22, %v700_v45  ;;  %v720_v18 = vsel %vm719_vm0, %v712_v27, %v701_v52  ;;  %vm721_vm3 = vcmp.lt.s32.totalorder %v714_v28, %v702_v63  ;;  %vm723_vm4 = vcmp.lt.s32.totalorder %v716_v3, %v703_v9 }
 0x1c4   :  { %v722_v19 = vsel %vm721_vm3, %v714_v28, %v702_v63  ;;  %v724_v24 = vsel %vm723_vm4, %v716_v3, %v703_v9  ;;  %vm725_vm5 = vcmp.lt.s32.totalorder %v718_v33, %v704_v15  ;;  %vm727_vm6 = vcmp.lt.s32.totalorder %v720_v18, %v705_v21 }
 0x1c5   :  { %v726_v25 = vsel %vm725_vm5, %v718_v33, %v704_v15  ;;  %v728_v6 = vsel %vm727_vm6, %v720_v18, %v705_v21  ;;  %vm729_vm7 = vcmp.lt.s32.totalorder %v722_v19, %v706_v31  ;;  %vm766_vm1 = vcmask 1041408  }
 0x1c6   :  { %v730_v4 = vsel %vm729_vm7, %v722_v19, %v706_v31  ;;  %vm731_vm8 = vcmp.lt.s32.totalorder %v724_v24, %v726_v25 }
 0x1c7   :  { %v732_v29 = vsel %vm731_vm8, %v724_v24, %v726_v25  ;;  %vm733_vm9 = vcmp.lt.s32.totalorder %v728_v6, %v730_v4 }
 0x1c8   :  { %v734_v58 = vsel %vm733_vm9, %v728_v6, %v730_v4 }
 0x1c9   :  { %vm735_vm10 = vcmp.lt.s32.totalorder %v732_v29, %v734_v58 }
 0x1ca   :  { %v736_v7 = vsel %vm735_vm10, %v732_v29, %v734_v58 }
 0x1cb   :  { %v737_v5 = vrot.slane %v736_v7, 4 }
 0x1cd   :  { %vm738_vm11 = vcmp.lt.s32.totalorder %v736_v7, %v737_v5 }
 0x1ce   :  { %v739_v10 = vsel %vm738_vm11, %v736_v7, %v737_v5 }
 0x1cf   :  { %v740_v38 = vrot.slane %v739_v10, 2 }
 0x1d1   :  { %vm741_vm12 = vcmp.lt.s32.totalorder %v739_v10, %v740_v38 }
 0x1d2   :  { %v742_v36 = vsel %vm741_vm12, %v739_v10, %v740_v38 }
 0x1d3   :  { %v743_v46 = vrot.slane %v742_v36, 1 }
 0x1d5   :  { %vm744_vm13 = vcmp.lt.s32.totalorder %v742_v36, %v743_v46 }
 0x1d6   :  { %v745_v30 = vsel %vm744_vm13, %v742_v36, %v743_v46 }
 0x1d7   :  { %vm746_vm14 = vcmp.lt.s32.totalorder %v1233_v1, %v745_v30 }
 0x1d8   :  { %v747_v32 = vsel %vm746_vm14, %v1233_v1, %v745_v30 }
 0x1d9   :  { %v762_v49 = vand.u32 1, %v747_v32 }
 0x1db   :  { %vm763_vm15 = vcmp.eq.s32.totalorder %v1432_v62, %v762_v49 }
 0x1dc   :  { %v764_v39 = vsel %vm763_vm15, 1, %v992_v0 }
 0x1dd   :  { %v765_v37 = vadd.s32 %v764_v39, %v1507_v55 }
 0x1df   :  { %v767_v34 = vsel %vm766_vm1, %v765_v37, 2147483648 }
 0x1e0   :  { %v768_v44 = vrot.slane %v767_v34, 4 }
 0x1e2   :  { %vm769_vm2 = vcmp.gt.s32.totalorder %v767_v34, %v768_v44 }
 0x1e3   :  { %v770_v26 = vsel %vm769_vm2, %v767_v34, %v768_v44 }
 0x1e4   :  { %v771_v42 = vrot.slane %v770_v26, 2 }
 0x1e6   :  { %vm772_vm0 = vcmp.gt.s32.totalorder %v770_v26, %v771_v42 }
 0x1e7   :  { %v773_v35 = vsel %vm772_vm0, %v770_v26, %v771_v42 }
 0x1e8   :  { %v774_v48 = vrot.slane %v773_v35, 1 }
 0x1ea   :  { %vm775_vm3 = vcmp.gt.s32.totalorder %v773_v35, %v774_v48 }
 0x1eb   :  { %v776_v53 = vsel %vm775_vm3, %v773_v35, %v774_v48 }
 0x1ec   :  { %vm777_vm4 = vcmp.ge.s32.totalorder %v765_v37, %v776_v53 }
 0x1ed   :  { %v778_v1 = vsel %vm777_vm4, %v1432_v62, 2 }
 0x1ee   :  { %v779_v61 = vsel %vm766_vm1, %v778_v1, 2147483647 }
 0x1ef   :  { %v780_v54 = vrot.slane %v779_v61, 4 }
 0x1f1   :  { %vm781_vm5 = vcmp.lt.s32.totalorder %v779_v61, %v780_v54 }
 0x1f2   :  { %v782_v0 = vsel %vm781_vm5, %v779_v61, %v780_v54 }
 0x1f3   :  { %v783_v51 = vrot.slane %v782_v0, 2 }
 0x1f5   :  { %vm784_vm6 = vcmp.lt.s32.totalorder %v782_v0, %v783_v51 }
 0x1f6   :  { %v785_v55 = vsel %vm784_vm6, %v782_v0, %v783_v51 }
 0x1f7   :  { %v786_v57 = vrot.slane %v785_v55, 1 }
 0x1f9   :  { %vm787_vm7 = vcmp.lt.s32.totalorder %v785_v55, %v786_v57 }
 0x1fa   :  { %v788_v59 = vsel %vm787_vm7, %v785_v55, %v786_v57 }
 0x1fb   :  { %789 = vst [vmem:[#allocation10] sm:$0x1] %v788_v59 }
 0x1fc   :  { %970 = shalt.err (!%p967_p0)
}
 0x1fd   :  { %s971_s26 = scalar_lea.hbm %s1574_s3, 16 }
 0x1fe   :  { %p972_p1 = scmp.ne.s32.totalorder %s1574_s3, %s971_s26  ;;  %p975_p2 = scmp.lt.u32.totalorder %s971_s26, %s1574_s3 }
 0x200   :  { %p977_p3 = pnand %p975_p2, %p972_p1 }
 0x202   :  { %980 = shalt.err (!%p977_p3)
}
 0x203   :  { %799 = dma.vmem_to_hbm [thread:$0]  %s797_s21, 16, %s1574_s3, [#allocation6]  }
 0x204   :  { %985 = dma.done.wait [#allocation6], 16  }
 0x205   :  { %986 = vsyncadd [#allocation6], 4294967280 }
 0x206   :  { %803 = vsyncpa [#allocation5], 1 }
 0x207   :  { %804 = vsyncpa [#allocation8], 1 }
 0x208   :  { %805 = vsyncpa [#allocation6], 1 }

</bundles_post_ra>
